<compile_context>
chip_gen: v6e
topology: v6e:2x2x1
jax: 0.10.0
libtpu: 0.0.40
codegen_flags: <defaults>
</compile_context>

<pallas_src>
import jax
import jax.numpy as jnp
from jax import lax
from jax.experimental import pallas as pl
from jax.experimental.pallas import tpu as pltpu

_NEG_INF = -1e30  # padding value for extra vocab lanes (finite -> no inf-inf NaNs)


def _round_up(x, m):
    return (x + m - 1) // m * m


def _gather_rows(idx_sm, base, n_rows, table_hbm, dst_ref, sem):
    """DMA-gather rows: dst_ref[r, :] = table_hbm[idx_sm[base + r], :] for r in [0, n_rows)."""

    def issue(r, carry):
        row = idx_sm[base + r]
        pltpu.make_async_copy(
            table_hbm.at[pl.ds(row, 1)], dst_ref.at[pl.ds(r, 1)], sem
        ).start()
        return carry

    lax.fori_loop(0, n_rows, issue, 0)

    def drain(r, carry):
        # Wait descriptor only needs the per-copy transfer size (one row).
        pltpu.make_async_copy(
            table_hbm.at[pl.ds(0, 1)], dst_ref.at[pl.ds(0, 1)], sem
        ).wait()
        return carry

    lax.fori_loop(0, n_rows, drain, 0)


def _make_logits_kernel(tn):
    """Inference variant: gather only, no cross-entropy work."""

    def kernel(idx_sm, table_hbm, logits_ref, sem):
        i = pl.program_id(0)
        _gather_rows(idx_sm, i * tn, tn, table_hbm, logits_ref, sem)

    return kernel


def _make_loss_kernel(tn, vp, n_valid):
    """Training variant: gather + fused masked cross-entropy (running sum)."""

    def kernel(idx_sm, tgt_ref, table_hbm, logits_ref, loss_ref, sem, acc_ref):
        i = pl.program_id(0)
        base = i * tn
        _gather_rows(idx_sm, base, tn, table_hbm, logits_ref, sem)

        logits = logits_ref[...]                                   # (tn, vp) f32
        m = jnp.max(logits, axis=-1, keepdims=True)                # (tn, 1)
        lse = m + jnp.log(jnp.sum(jnp.exp(logits - m), axis=-1, keepdims=True))

        col = lax.broadcasted_iota(jnp.int32, (tn, vp), 1)
        tgt = tgt_ref[...]                                         # (tn, 1) int32
        tgt_logit = jnp.sum(jnp.where(col == tgt, logits, 0.0),
                            axis=-1, keepdims=True)                # (tn, 1)

        row = lax.broadcasted_iota(jnp.int32, (tn, 1), 0) + base
        ce = jnp.where(row < n_valid, lse - tgt_logit, 0.0)        # mask padded rows
        block_sum = jnp.sum(ce)

        @pl.when(i == 0)
        def _():
            acc_ref[0] = 0.0

        acc_ref[0] += block_sum

        @pl.when(i == pl.num_programs(0) - 1)
        def _():
            loss_ref[0, 0] = acc_ref[0] / n_valid

    return kernel


def bigram_forward(idx, table, targets=None):
    """Forward pass of the bigram LM.

    idx:     (B, T) int32
    table:   (V, V) float32
    targets: (B, T) int32 or None
    returns: (logits (B, T, V) f32, loss scalar f32 or None)
    """
    B, T = idx.shape
    V = table.shape[0]
    N = B * T

    Vp = _round_up(V, 128)                       # lane-dense last dim
    # Cap each pipelined logits buffer at ~4 MiB so double-buffering stays well
    # under every chip's default scoped VMEM limit.
    tn_cap = max(8, ((4 * 1024 * 1024) // (Vp * 4)) // 8 * 8)
    TN = min(256, tn_cap, _round_up(N, 8))
    N_pad = _round_up(N, TN)
    n_blocks = N_pad // TN

    table_p = table.astype(jnp.float32)
    if Vp != V:
        table_p = jnp.pad(table_p, ((0, 0), (0, Vp - V)), constant_values=_NEG_INF)

    idx_flat = idx.reshape(N).astype(jnp.int32)
    if N_pad != N:
        idx_flat = jnp.pad(idx_flat, (0, N_pad - N))

    out_logits_shape = jax.ShapeDtypeStruct((N_pad, Vp), jnp.float32)
    logits_spec = pl.BlockSpec((TN, Vp), lambda i, idx_sm: (i, 0))
    table_spec = pl.BlockSpec(memory_space=pl.ANY)   # table stays in HBM; gathered per row

    if targets is None:
        logits_p = pl.pallas_call(
            _make_logits_kernel(TN),
            out_shape=out_logits_shape,
            grid_spec=pltpu.PrefetchScalarGridSpec(
                num_scalar_prefetch=1,
                grid=(n_blocks,),
                in_specs=[table_spec],
                out_specs=logits_spec,
                scratch_shapes=[pltpu.SemaphoreType.DMA],
            ),
            compiler_params=pltpu.CompilerParams(
                dimension_semantics=("parallel",)),
            cost_estimate=pl.CostEstimate(
                flops=0, transcendentals=0,
                bytes_accessed=2 * N_pad * Vp * 4 + N_pad * 4),
        )(idx_flat, table_p)
        return logits_p[:N, :V].reshape(B, T, V), None

    tgt_flat = targets.reshape(N).astype(jnp.int32)
    if N_pad != N:
        tgt_flat = jnp.pad(tgt_flat, (0, N_pad - N))
    tgt_col = tgt_flat.reshape(N_pad, 1)

    logits_p, loss = pl.pallas_call(
        _make_loss_kernel(TN, Vp, N),
        out_shape=(out_logits_shape,
                   jax.ShapeDtypeStruct((1, 1), jnp.float32)),
        grid_spec=pltpu.PrefetchScalarGridSpec(
            num_scalar_prefetch=1,
            grid=(n_blocks,),
            in_specs=[pl.BlockSpec((TN, 1), lambda i, idx_sm: (i, 0)),  # targets
                      table_spec],
            out_specs=(logits_spec,
                       pl.BlockSpec(memory_space=pltpu.MemorySpace.SMEM)),
            scratch_shapes=[pltpu.SemaphoreType.DMA,
                            pltpu.SMEM((1,), jnp.float32)],
        ),
        compiler_params=pltpu.CompilerParams(
            dimension_semantics=("arbitrary",)),   # loss accumulator carried across grid
        cost_estimate=pl.CostEstimate(
            flops=6 * N_pad * Vp, transcendentals=N_pad * Vp,
            bytes_accessed=2 * N_pad * Vp * 4 + 2 * N_pad * 4),
    )(idx_flat, tgt_col, table_p)

    return logits_p[:N, :V].reshape(B, T, V), loss[0, 0]


def _reference_forward(idx, table, targets):
    # pure-JAX reference for sanity checking
    logits = table[idx]                                   # (B, T, V)
    B, T, V = logits.shape
    lf = logits.reshape(B * T, V)
    tf = targets.reshape(B * T)
    lse = jax.scipy.special.logsumexp(lf, axis=-1)
    tgt_logit = jnp.take_along_axis(lf, tf[:, None], axis=-1)[:, 0]
    loss = jnp.mean(lse - tgt_logit)
    return logits, loss


if __name__ == "__main__":
    vocab_size = 32
    B, T = 2, 8

    key = jax.random.PRNGKey(0)
    k_table, k_idx, k_tgt = jax.random.split(key, 3)

    # nn.Embedding(vocab_size, vocab_size) initializes weights ~ N(0, 1)
    table = jax.random.normal(k_table, (vocab_size, vocab_size), dtype=jnp.float32)
    idx = jax.random.randint(k_idx, (B, T), 0, vocab_size, dtype=jnp.int32)
    targets = jax.random.randint(k_tgt, (B, T), 0, vocab_size, dtype=jnp.int32)

    # training path: logits + fused cross-entropy
    logits, loss = bigram_forward(idx, table, targets)
    logits = jax.block_until_ready(logits)
    loss = jax.block_until_ready(loss)

    ref_logits, ref_loss = _reference_forward(idx, table, targets)
    assert logits.shape == (B, T, vocab_size)
    assert jnp.allclose(logits, ref_logits, atol=1e-5), "logits mismatch"
    assert jnp.allclose(loss, ref_loss, atol=1e-5), "loss mismatch"

    # inference path (targets=None): logits-only kernel, no CE work, no dummy target DMA
    logits_inf, loss_inf = bigram_forward(idx, table, None)
    logits_inf = jax.block_until_ready(logits_inf)
    assert loss_inf is None
    assert jnp.allclose(logits_inf, ref_logits, atol=1e-5), "inference logits mismatch"

    # TODO(synk): generate() (autoregressive multinomial sampling loop) is host-side
    # control flow, not a kernel hot path; it is not implemented here.
    print("KERNEL_OK")
</pallas_src>

<mosaic_0001>
module attributes {stable_mosaic.version = 11 : i64} {
  func.func @kernel(%arg0: i32, %arg1: memref<16xi32, #tpu.memory_space<smem>>, %arg2: memref<16x1xi32, #tpu.memory_space<vmem>>, %arg3: memref<32x128xf32, #tpu.memory_space<any>>, %arg4: memref<16x128xf32, #tpu.memory_space<vmem>>, %arg5: memref<1x1xf32, #tpu.memory_space<smem>>, %arg6: memref<!tpu.dma_semaphore, #tpu.memory_space<semaphore_mem>>, %arg7: memref<1xf32, #tpu.memory_space<smem>>) attributes {dimension_semantics = [#tpu.dimension_semantics<arbitrary>], iteration_bounds = array<i64: 1>, scalar_prefetch = 1 : i64, scratch_operands = 2 : i64, tpu.core_type = #tpu.core_type<tc>, window_params = [{transform_indices = @transform_0, window_bounds = array<i64: 16, 1>}, {}, {transform_indices = @transform_2, window_bounds = array<i64: 16, 128>}, {transform_indices = @transform_3, window_bounds = array<i64: 1, 1>}]} {
    %c16_i32 = arith.constant 16 : i32
    %0 = arith.muli %arg0, %c16_i32 : i32
    %c0_i32 = arith.constant 0 : i32
    %c16_i32_0 = arith.constant 16 : i32
    %1 = arith.addi %c0_i32, %c16_i32_0 : i32
    %c1_i32 = arith.constant 1 : i32
    scf.for %arg8 = %c0_i32 to %1 step %c1_i32  : i32 {
      %42 = arith.addi %0, %arg8 : i32
      %43 = arith.index_cast %42 : i32 to index
      %44 = memref.load %arg1[%43] : memref<16xi32, #tpu.memory_space<smem>>
      %c0_i32_20 = arith.constant 0 : i32
      %45 = tpu.memref_slice %arg3[%44, %c0_i32_20] : memref<32x128xf32, #tpu.memory_space<any>> -> memref<1x128xf32, #tpu.memory_space<any>>
      %c0_i32_21 = arith.constant 0 : i32
      %46 = tpu.memref_slice %arg4[%arg8, %c0_i32_21] : memref<16x128xf32, #tpu.memory_space<vmem>> -> memref<1x128xf32, #tpu.memory_space<vmem>>
      tpu.enqueue_dma source(%45 : memref<1x128xf32, #tpu.memory_space<any>>) target(%46 : memref<1x128xf32, #tpu.memory_space<vmem>>) target_semaphore(%arg6 : memref<!tpu.dma_semaphore, #tpu.memory_space<semaphore_mem>>)
    }
    %c16_i32_1 = arith.constant 16 : i32
    %c0_i32_2 = arith.constant 0 : i32
    %c16_i32_3 = arith.constant 16 : i32
    %2 = arith.addi %c0_i32_2, %c16_i32_3 : i32
    %c1_i32_4 = arith.constant 1 : i32
    scf.for %arg8 = %c0_i32_2 to %2 step %c1_i32_4  : i32 {
      %c0_i32_20 = arith.constant 0 : i32
      %c0_i32_21 = arith.constant 0 : i32
      %42 = tpu.memref_slice %arg3[%c0_i32_20, %c0_i32_21] : memref<32x128xf32, #tpu.memory_space<any>> -> memref<1x128xf32, #tpu.memory_space<any>>
      %c0_i32_22 = arith.constant 0 : i32
      %c0_i32_23 = arith.constant 0 : i32
      %43 = tpu.memref_slice %arg4[%c0_i32_22, %c0_i32_23] : memref<16x128xf32, #tpu.memory_space<vmem>> -> memref<1x128xf32, #tpu.memory_space<vmem>>
      tpu.wait_dma2 semaphore(%arg6 : memref<!tpu.dma_semaphore, #tpu.memory_space<semaphore_mem>>) src(%42 : memref<1x128xf32, #tpu.memory_space<any>>) dst(%43 : memref<1x128xf32, #tpu.memory_space<vmem>>)
    }
    %c0 = arith.constant 0 : index
    %c0_5 = arith.constant 0 : index
    %3 = vector.load %arg4[%c0, %c0_5] : memref<16x128xf32, #tpu.memory_space<vmem>>, vector<16x128xf32>
    %cst = arith.constant dense<0xFF800000> : vector<16xf32>
    %4 = vector.multi_reduction <maximumf>, %3, %cst [1] : vector<16x128xf32> to vector<16xf32>
    %5 = vector.shape_cast %4 : vector<16xf32> to vector<16x1xf32>
    %6 = vector.broadcast %5 : vector<16x1xf32> to vector<16x128xf32>
    %7 = arith.subf %3, %6 : vector<16x128xf32>
    %8 = math.exp %7 : vector<16x128xf32>
    %cst_6 = arith.constant dense<0.000000e+00> : vector<16xf32>
    %9 = vector.multi_reduction <add>, %8, %cst_6 [1] : vector<16x128xf32> to vector<16xf32>
    %10 = vector.shape_cast %9 : vector<16xf32> to vector<16x1xf32>
    %11 = math.log %10 : vector<16x1xf32>
    %12 = arith.addf %5, %11 : vector<16x1xf32>
    %13 = tpu.iota {dimensions = array<i32: 1>} : vector<16x128xi32>
    %c0_7 = arith.constant 0 : index
    %c0_8 = arith.constant 0 : index
    %14 = vector.load %arg2[%c0_7, %c0_8] : memref<16x1xi32, #tpu.memory_space<vmem>>, vector<16x1xi32>
    %15 = vector.broadcast %14 : vector<16x1xi32> to vector<16x128xi32>
    %16 = arith.cmpi eq, %13, %15 : vector<16x128xi32>
    %cst_9 = arith.constant 0.000000e+00 : f32
    %17 = vector.broadcast %cst_9 : f32 to vector<16x128xf32>
    %18 = arith.select %16, %3, %17 : vector<16x128xi1>, vector<16x128xf32>
    %cst_10 = arith.constant dense<0.000000e+00> : vector<16xf32>
    %19 = vector.multi_reduction <add>, %18, %cst_10 [1] : vector<16x128xf32> to vector<16xf32>
    %20 = vector.shape_cast %19 : vector<16xf32> to vector<16x1xf32>
    %21 = tpu.iota {dimensions = array<i32: 0>} : vector<16x1xi32>
    %22 = vector.broadcast %0 : i32 to vector<16x1xi32>
    %23 = arith.addi %21, %22 : vector<16x1xi32>
    %c16_i32_11 = arith.constant 16 : i32
    %24 = vector.broadcast %c16_i32_11 : i32 to vector<16x1xi32>
    %25 = arith.cmpi slt, %23, %24 : vector<16x1xi32>
    %26 = arith.subf %12, %20 : vector<16x1xf32>
    %cst_12 = arith.constant 0.000000e+00 : f32
    %27 = vector.broadcast %cst_12 : f32 to vector<16x1xf32>
    %28 = arith.select %25, %26, %27 : vector<16x1xi1>, vector<16x1xf32>
    %29 = vector.shape_cast %28 : vector<16x1xf32> to vector<1x16x1xf32>
    %cst_13 = arith.constant dense<0.000000e+00> : vector<1xf32>
    %30 = vector.multi_reduction <add>, %29, %cst_13 [1, 2] : vector<1x16x1xf32> to vector<1xf32>
    %31 = vector.shape_cast %30 : vector<1xf32> to vector<1x1x1xf32>
    %32 = vector.extract %31[0, 0, 0] : f32 from vector<1x1x1xf32>
    %c0_i32_14 = arith.constant 0 : i32
    %33 = arith.cmpi eq, %arg0, %c0_i32_14 : i32
    %34 = arith.extui %33 : i1 to i32
    %c0_i32_15 = arith.constant 0 : i32
    %35 = arith.cmpi ne, %34, %c0_i32_15 : i32
    scf.if %35 {
      %cst_20 = arith.constant 0.000000e+00 : f32
      %c0_21 = arith.constant 0 : index
      %42 = memref.load %arg7[%c0_21] : memref<1xf32, #tpu.memory_space<smem>>
      memref.store %cst_20, %arg7[%c0_21] : memref<1xf32, #tpu.memory_space<smem>>
    } else {
    }
    %c0_16 = arith.constant 0 : index
    %36 = memref.load %arg7[%c0_16] : memref<1xf32, #tpu.memory_space<smem>>
    %37 = arith.addf %36, %32 : f32
    %c0_17 = arith.constant 0 : index
    %38 = memref.load %arg7[%c0_17] : memref<1xf32, #tpu.memory_space<smem>>
    memref.store %37, %arg7[%c0_17] : memref<1xf32, #tpu.memory_space<smem>>
    %c0_i32_18 = arith.constant 0 : i32
    %39 = arith.cmpi eq, %arg0, %c0_i32_18 : i32
    %40 = arith.extui %39 : i1 to i32
    %c0_i32_19 = arith.constant 0 : i32
    %41 = arith.cmpi ne, %40, %c0_i32_19 : i32
    scf.if %41 {
      %c0_20 = arith.constant 0 : index
      %42 = memref.load %arg7[%c0_20] : memref<1xf32, #tpu.memory_space<smem>>
      %cst_21 = arith.constant 1.600000e+01 : f32
      %43 = arith.divf %42, %cst_21 : f32
      %c0_22 = arith.constant 0 : index
      %c0_23 = arith.constant 0 : index
      %44 = memref.load %arg5[%c0_22, %c0_23] : memref<1x1xf32, #tpu.memory_space<smem>>
      memref.store %43, %arg5[%c0_22, %c0_23] : memref<1x1xf32, #tpu.memory_space<smem>>
    } else {
    }
    return
  }
  func.func @transform_0(%arg0: i32, %arg1: memref<16xi32, #tpu.memory_space<smem>>) -> (i32, i32) {
    %c0_i32 = arith.constant 0 : i32
    %c0_i32_0 = arith.constant 0 : i32
    return %arg0, %c0_i32 : i32, i32
  }
  func.func @transform_2(%arg0: i32, %arg1: memref<16xi32, #tpu.memory_space<smem>>) -> (i32, i32) {
    %c0_i32 = arith.constant 0 : i32
    %c0_i32_0 = arith.constant 0 : i32
    return %arg0, %c0_i32 : i32, i32
  }
  func.func @transform_3(%arg0: i32, %arg1: memref<16xi32, #tpu.memory_space<smem>>) -> (i32, i32) {
    %c0_i32 = arith.constant 0 : i32
    %c0_i32_0 = arith.constant 0 : i32
    %c0_i32_1 = arith.constant 0 : i32
    return %c0_i32, %c0_i32_0 : i32, i32
  }
}

</mosaic_0001>

<bundles_post_ra>
// kernel: tpu_custom_call.1
= control target key start
LH: loop header
LB: loop body
LE: loop exit
PB: predicated region body
PF: predicated region fallthrough
CT: control target
= control target key end

     0   :  { %s385_s0 = inlined_call_operand.vmem [shape: s32[16], index: 0, kind: input, shape index: {}]   ;;  %s386_s1 = inlined_call_operand.vmem [shape: s32[16,1], index: 1, kind: input, shape index: {}]   ;;  %s387_s2 = inlined_call_operand.hbm [shape: f32[32,128], index: 2, kind: input, shape index: {}]   ;;  %s388_s3 = inlined_call_operand.hbm [shape: f32[16,128], index: 3, kind: output, shape index: {0}]   ;;  %s389_s4 = inlined_call_operand.hbm [shape: f32[1,1], index: 4, kind: output, shape index: {1}]  }
   0x1   :  { %s10_s17 = sshll.u32 %s385_s0, 4  ;;  %s11_s17 = int_to_ptr.vmem [resolvable:$true] %s10_s17 }
   0x2   :  { %s220_s18 = scalar_lea.vmem %s11_s17, 16  ;;  %p225_p1 = scmp.lt.s32.totalorder %s11_s17, %s11_s17 }
   0x3   :  { %p221_p0 = scmp.ne.s32.totalorder %s11_s17, %s220_s18  ;;  %p226_p2 = scmp.lt.s32.totalorder %s220_s18, %s220_s18 }
   0x5   :  { %p227_p3 = por %p226_p2, %p225_p1 }
   0x7   :  { %p228_p4 = pnand %p227_p3, %p221_p0 }
   0x9   :  { %231 = shalt.err (!%p228_p4)  }
   0xa   :  { %s306_s19 = smov [#allocation5]  }
   0xb   :  { %13 = dma.vmem_to_smem %s11_s17, 16, %s306_s19, [#allocation4] }
   0xc   :  { %290 = dma.done.wait [#allocation4], 16 }
   0xd   :  { %291 = vsyncadd [#allocation4], 4294967280 }
   0xe   :  { %15 = sfence }
   0xf   :  { %16 = vsyncpa [#allocation7], 0 }
  0x10   :  { %17 = vsyncpa [#allocation8], 0  ;;  %s340_s20 = smov 0  }
  0x11 LB: > { %s28_s0 = sld [smem:[#allocation5 + %s300_s20]]  ;;  %s31_s21 = scalar_lea.vmem [#allocation6], %s300_s20  ;;  %s300_s20 = sphi %s340_s20, %s26_s20  }
  0x12   : > { %s39_s22 = sshll.u32 %s31_s21, 4  ;;  %s234_s30 = scalar_lea.hbm %s387_s2, 512  ;;  %s40_s22 = int_to_ptr.vmem [resolvable:$true] %s39_s22 }
  0x17   : > { %s184_s23 = sshll.u32 %s28_s0, 4 }
  0x18   : > { %s30_s26 = scalar_lea.hbm %s387_s2, %s184_s23 }
  0x19   : > { %s232_s27 = scalar_lea.hbm %s30_s26, 16  ;;  %p235_p6 = scmp.lt.s32.totalorder %s30_s26, %s387_s2 }
  0x1a   : > { %p233_p5 = scmp.ne.s32.totalorder %s30_s26, %s232_s27  ;;  %p236_p7 = scmp.lt.s32.totalorder %s234_s30, %s232_s27 }
  0x1c   : > { %p237_p8 = por %p236_p7, %p235_p6 }
  0x1e   : > { %p238_p9 = pnand %p237_p8, %p233_p5 }
  0x20   : > { %241 = shalt.err (!%p238_p9)  }
  0x21   : > { %s242_s7 = scalar_lea.vmem %s40_s22, 16  ;;  %s307_s8 = smov [#allocation6]  }
  0x22   : > { %p243_p10 = scmp.ne.s32.totalorder %s40_s22, %s242_s7  ;;  %s244_s9 = sshll.u32 %s307_s8, 4  ;;  %s356_s9 = int_to_ptr.vmem [resolvable:$false] %s244_s9 }
  0x23   : > { %s359_s10 = scalar_lea.vmem %s356_s9, 256  ;;  %p247_p11 = scmp.lt.s32.totalorder %s40_s22, %s356_s9 }
  0x24   : > { %p248_p12 = scmp.lt.s32.totalorder %s359_s10, %s242_s7 }
  0x26   : > { %p249_p13 = por %p248_p12, %p247_p11 }
  0x28   : > { %p250_p0 = pnand %p249_p13, %p243_p10 }
  0x2a   : > { %253 = shalt.err (!%p250_p0)  }
  0x2b   : > { %42 = dma.hbm_to_vmem [thread:$0]  %s30_s26, 16, %s40_s22, [#allocation2] }
  0x2c   : > { %s26_s20 = sadd.s32 1, %s300_s20  }
  0x2d   : > { %p23_p1 = scmp.ge.s32.totalorder %s26_s20, 16  }
  0x2e   :  { %s302_s11 = smov (%p23_p1), 0  }
  0x2f   :  { %25 = sbr.rel (!%p23_p1) target bundleno = 17 (0x11), region = 63 }
  0x34 LB: > { %292 = dma.done.wait [#allocation2], 16  ;;  %s304_s11 = sphi %s302_s11, %s48_s11  }
  0x35   : > { %293 = vsyncadd [#allocation2], 4294967280  ;;  %s48_s11 = sadd.s32 1, %s304_s11  }
  0x36   : > { %p45_p2 = scmp.ge.s32.totalorder %s48_s11, 16  }
  0x37   :  { %v52_v0 = vld [vmem:[#allocation6] sm:$0xff] (%p45_p2)  ;;  %v308_v2 = vmov (%p45_p2), 0   ;;  %v53_v3 = vld [vmem:[#allocation6 + $0x8] sm:$0xff] (%p45_p2)  ;;  %v74_v11 = vlaneseq (%p45_p2)  ;;  %vm104_vm2 = vcmask (%p45_p2), 7168   ;;  %p255_p3 = scmp.ne.s32.totalorder (%p45_p2), %s356_s9, %s359_s10  ;;  %p259_p4 = scmp.lt.s32.totalorder (%p45_p2), %s356_s9, %s356_s9 }
  0x38   :  { %47 = sbr.rel (!%p45_p2) target bundleno = 52 (0x34), region = 74  ;;  %v76_v1 = vld [vmem:[%s386_s1] sm:$0xff] (%p45_p2)  ;;  %54 = vmax.xlane.f32.xlu0 (%p45_p2), %v52_v0  ;;  %210 = vset.pattern.permute.xlu1 (%p45_p2), %v308_v2  ;;  %v77_v4 = vld [vmem:[%s386_s1 + $0x8] sm:$0xff] (%p45_p2)  ;;  %p260_p5 = scmp.lt.s32.totalorder (%p45_p2), %s359_s10, %s359_s10 }
  0x39   :  { %79 = vperm.xlu1 (%p45_p2), %210, %v76_v1   ;;  %211 = vset.pattern.permute.xlu0 (%p45_p2), %v308_v2  ;;  %v75_v13 = vand.u32 (%p45_p2), 127, %v74_v11 }
  0x3a   :  { %p261_p6 = por (%p45_p2), %p260_p5, %p259_p4 }
  0x3c   :  { %56 = vmax.xlane.f32.xlu0 (%p45_p2), %v53_v3  ;;  %p262_p7 = pnand (%p45_p2), %p261_p6, %p255_p3 }
  0x3d   :  { %82 = vperm.xlu1 %210, %v77_v4  }
  0xb4   :  { %v80_v12 = vpop.permute.xlu1 %79 }
  0xb5   :  { %vm84_vm0 = vcmp.eq.s32.totalorder %v75_v13, %v80_v12 }
  0xb6   :  { %v86_v16 = vsel %vm84_vm0, %v52_v0, 0.0 }
  0xb8   :  { %v83_v15 = vpop.permute.xlu1 %82 }
  0xb9   :  { %vm85_vm1 = vcmp.eq.s32.totalorder %v75_v13, %v83_v15 }
  0xba   :  { %v87_v18 = vsel %vm85_vm1, %v53_v3, 0.0 }
  0xc1   :  { %v55_v5 = vpop.xlane.xlu0 %54 }
  0xc2   :  { %v58_v6 = vsub.f32 %v52_v0, %v55_v5 }
  0xc4   :  { %v60_v7 = vmul.f32 1.442695, %v58_v6 }
  0xc5   :  { %v57_v8 = vpop.xlane.xlu0 %56 }
  0xc6   :  { %212 = vpow2.f32 %v60_v7  ;;  %v59_v9 = vsub.f32 %v53_v3, %v57_v8 }
  0xc8   :  { %v62_v10 = vmul.f32 1.442695, %v59_v9 }
  0xca   :  { %214 = vpow2.f32 %v62_v10 }
  0xd3   :  { %v213_v14 = vpop.eup %212 }
  0xd4   :  { %64 = vadd.xlane.f32.xlu0 %v213_v14 }
  0xd7   :  { %v215_v17 = vpop.eup %214 }
  0xd8   :  { %66 = vadd.xlane.f32.xlu1 %v215_v17  ;;  %88 = vadd.xlane.f32.xlu0 %v86_v16 }
  0xdc   :  { %90 = vadd.xlane.f32.xlu0 %v87_v18 }
 0x15d   :  { %v65_v19 = vpop.xlane.xlu0 %64 }
 0x15e   :  { %216 = vlog2.f32 %v65_v19 }
 0x161   :  { %v67_v20 = vpop.xlane.xlu1 %66  ;;  %v89_v23 = vpop.xlane.xlu0 %88 }
 0x162   :  { %218 = vlog2.f32 %v67_v20 }
 0x165   :  { %v91_v29 = vpop.xlane.xlu0 %90 }
 0x16b   :  { %v217_v21 = vpop.eup %216 }
 0x16c   :  { %v69_v22 = vmul.f32 0.6931472, %v217_v21 }
 0x16e   :  { %v72_v24 = vadd.f32 %v69_v22, %v55_v5 }
 0x16f   :  { %v219_v25 = vpop.eup %218 }
 0x170   :  { %v71_v26 = vmul.f32 0.6931472, %v219_v25  ;;  %v100_v27 = vsub.f32 %v72_v24, %v89_v23 }
 0x172   :  { %v73_v28 = vadd.f32 %v71_v26, %v57_v8  ;;  %v105_v31 = vsel %vm104_vm2, %v100_v27, 0.0 }
 0x174   :  { %v101_v30 = vsub.f32 %v73_v28, %v91_v29 }
 0x176   :  { %v106_v32 = vsel %vm104_vm2, %v101_v30, 0.0 }
 0x177   :  { %v107_v33 = vadd.f32 %v106_v32, %v105_v31 }
 0x179   :  { %108 = vadd.xlane.f32.xlu0 %v107_v33 }
 0x17a   :  { %265 = shalt.err (!%p262_p7)
}
 0x17b   :  { %s309_s1 = smov 128   ;;  %s310_s15 = smov 8  }
 0x17c   :  { %147 = dma.vmem_to_hbm [thread:$0]  %s356_s9, 256, %s388_s3, [#allocation7], %s309_s1, %s309_s1, %s310_s15  }
 0x17d   :  { %s311_s20 = smov [#allocation9]  }
 0x202   :  { %v109_v34 = vpop.xlane.xlu0 %108 }
 0x203   :  { %v110_v35 = vrot.slane %v109_v34, 4 }
 0x205   :  { %v111_v36 = vadd.f32 %v110_v35, %v109_v34 }
 0x207   :  { %v112_v37 = vrot.slane %v111_v36, 2 }
 0x209   :  { %v113_v38 = vadd.f32 %v112_v37, %v111_v36 }
 0x20b   :  { %v114_v39 = vrot.slane %v113_v38, 1 }
 0x20d   :  { %v115_v40 = vadd.f32 %v114_v39, %v113_v38 }
 0x20f   :  { %186 = vpush %v115_v40 }
 0x240   :  { %s187_s18 = spop %186 }
 0x241   :  { %s133_s19 = smul.f32 0.0625, %s187_s18 }
 0x243   :  { %135 = sst [smem:[#allocation9]] %s133_s19 }
 0x244   :  { %155 = dma.smem_to_hbm %s311_s20, 16, %s389_s4, [#allocation8]  }
 0x245   :  { %294 = dma.done.wait [#allocation7], 256  }
 0x246   :  { %295 = vsyncadd [#allocation7], 4294967040 }
 0x247   :  { %296 = dma.done.wait [#allocation8], 16  }
 0x248   :  { %297 = vsyncadd [#allocation8], 4294967280 }
 0x249   :  { %162 = sfence }
 0x24a   :  { %163 = vsyncpa [#allocation7], 1 }
 0x24b   :  { %164 = vsyncpa [#allocation8], 1 }
 0x24c   :  { %165 = vsyncmov [#allocation2] }
 0x24f   :  { %s166_s3 = vpop.sfrf %165 }
 0x250   :  { %p185_p8 = scmp.ne.s32.totalorder %s166_s3, 0 }
 0x252   :  { %170 = shalt.err (%p185_p8)  }

</bundles_post_ra>
